<compile_context>
chip_gen: v6e
topology: v6e:2x2x1
jax: 0.10.0
libtpu: 0.0.40
codegen_flags: <defaults>
</compile_context>

<pallas_src>
import jax
import jax.numpy as jnp
from jax.experimental import pallas as pl
from jax.experimental.pallas import tpu as pltpu

EPS = 1e-5


def _qln_kernel(x_ref, w_ref, b_ref, o_ref):
    # x_ref / o_ref: (1, 4, Cq, THW);  w_ref / b_ref: (4, Cq, 1)
    x = x_ref[...].astype(jnp.float32)
    mu = jnp.mean(x, axis=2, keepdims=True)            # reduce over Cq (sublanes, XLU)
    xm = x - mu
    var = jnp.mean(xm * xm, axis=2, keepdims=True)     # biased variance (unbiased=False)
    inv = jax.lax.rsqrt(var + EPS)                     # EUP slot (free relative to VPU)
    w = w_ref[...][None].astype(jnp.float32)           # (1, 4, Cq, 1)
    b = b_ref[...][None].astype(jnp.float32)
    o_ref[...] = (xm * inv * w + b).astype(o_ref.dtype)


def _pick_spatial_tile(hw, cq, itemsize, budget_bytes=2 << 20):
    """Largest lane tile (multiple of 128 dividing hw) whose (4,Cq,tile) block
    fits the byte budget; falls back to the full extent (always legal)."""
    max_lanes = budget_bytes // max(1, 4 * cq * itemsize)
    if hw <= max(128, max_lanes):
        return hw
    best = None
    t = 128
    while t <= min(hw, max_lanes):
        if hw % t == 0:
            best = t
        t += 128
    return best if best is not None else hw


def quat_layer_norm(x, weight_r, weight_i, weight_j, weight_k,
                    bias_r, bias_i, bias_j, bias_k):
    """x: (B, C, H, W); weights/biases: (C//4,) each. Returns (B, C, H, W)."""
    B, C, H, W = x.shape
    assert C % 4 == 0
    Cq = C // 4
    HW = H * W

    # Zero-copy reinterpretation: NCHW is contiguous as (B, 4, Cq, H*W).
    x_q = x.reshape(B, 4, Cq, HW)
    w = jnp.stack([weight_r, weight_i, weight_j, weight_k], axis=0).reshape(4, Cq, 1)
    b = jnp.stack([bias_r, bias_i, bias_j, bias_k], axis=0).reshape(4, Cq, 1)

    thw = _pick_spatial_tile(HW, Cq, x.dtype.itemsize)

    out = pl.pallas_call(
        _qln_kernel,
        out_shape=jax.ShapeDtypeStruct((B, 4, Cq, HW), x.dtype),
        grid_spec=pltpu.PrefetchScalarGridSpec(
            num_scalar_prefetch=0,
            grid=(B, HW // thw),
            in_specs=[
                pl.BlockSpec((1, 4, Cq, thw), lambda bb, s: (bb, 0, 0, s)),
                pl.BlockSpec((4, Cq, 1), lambda bb, s: (0, 0, 0)),   # resident weight
                pl.BlockSpec((4, Cq, 1), lambda bb, s: (0, 0, 0)),   # resident bias
            ],
            out_specs=pl.BlockSpec((1, 4, Cq, thw), lambda bb, s: (bb, 0, 0, s)),
        ),
        compiler_params=pltpu.CompilerParams(
            dimension_semantics=("parallel", "parallel")),
    )(x_q, w, b)

    # Zero-copy back to NCHW.
    return out.reshape(B, C, H, W)


def _reference(x, wr, wi, wj, wk, br, bi, bj, bk):
    B, C, H, W = x.shape
    Cq = C // 4
    comps = jnp.split(x, 4, axis=1)
    ws = [wr, wi, wj, wk]
    bs = [br, bi, bj, bk]
    outs = []
    for c, w, b in zip(comps, ws, bs):
        c3 = jnp.transpose(c, (0, 2, 3, 1)).reshape(B, H * W, Cq)
        mu = c3.mean(-1, keepdims=True)
        var = ((c3 - mu) ** 2).mean(-1, keepdims=True)
        ln = (c3 - mu) / jnp.sqrt(var + EPS) * w + b
        outs.append(jnp.transpose(ln.reshape(B, H, W, Cq), (0, 3, 1, 2)))
    return jnp.concatenate(outs, axis=1)


def _run_case(key, B, C, H, W):
    Cq = C // 4
    keys = jax.random.split(key, 9)
    x = jax.random.normal(keys[0], (B, C, H, W), dtype=jnp.float32)
    wr, wi, wj, wk = (jax.random.normal(keys[i], (Cq,), jnp.float32) for i in range(1, 5))
    br, bi, bj, bk = (jax.random.normal(keys[i], (Cq,), jnp.float32) * 0.1 for i in range(5, 9))

    y = quat_layer_norm(x, wr, wi, wj, wk, br, bi, bj, bk)
    y = jax.block_until_ready(y)

    y_ref = _reference(x, wr, wi, wj, wk, br, bi, bj, bk)
    assert y.shape == (B, C, H, W)
    assert jnp.max(jnp.abs(y - y_ref)) < 1e-4


if __name__ == "__main__":
    key = jax.random.PRNGKey(0)
    k0, k1 = jax.random.split(key)

    # num_features = 32 -> Cq = 8, HW = 256 (lane-dense, multiple of 128)
    _run_case(k0, B=2, C=32, H=16, W=16)
    # ragged spatial extent (HW = 144, not a multiple of 128) -> full-extent tile
    _run_case(k1, B=1, C=32, H=12, W=12)

    print("KERNEL_OK")
</pallas_src>

<mosaic_0001>
module attributes {stable_mosaic.version = 11 : i64} {
  func.func @_qln_kernel(%arg0: i32, %arg1: i32, %arg2: memref<1x4x8x256xf32, #tpu.memory_space<vmem>>, %arg3: memref<4x8x1xf32, #tpu.memory_space<vmem>>, %arg4: memref<4x8x1xf32, #tpu.memory_space<vmem>>, %arg5: memref<1x4x8x256xf32, #tpu.memory_space<vmem>>) attributes {dimension_semantics = [#tpu.dimension_semantics<parallel>, #tpu.dimension_semantics<parallel>], iteration_bounds = array<i64: 2, 1>, scalar_prefetch = 0 : i64, scratch_operands = 0 : i64, tpu.core_type = #tpu.core_type<tc>, window_params = [{transform_indices = @transform_0, window_bounds = array<i64: 1, 4, 8, 256>}, {pipeline_mode = #tpu.pipeline_mode<synchronous>, transform_indices = @transform_1, window_bounds = array<i64: 4, 8, 1>}, {pipeline_mode = #tpu.pipeline_mode<synchronous>, transform_indices = @transform_2, window_bounds = array<i64: 4, 8, 1>}, {transform_indices = @transform_3, window_bounds = array<i64: 1, 4, 8, 256>}]} {
    %c0 = arith.constant 0 : index
    %c0_0 = arith.constant 0 : index
    %c0_1 = arith.constant 0 : index
    %c0_2 = arith.constant 0 : index
    %0 = vector.load %arg2[%c0, %c0_0, %c0_1, %c0_2] : memref<1x4x8x256xf32, #tpu.memory_space<vmem>>, vector<1x4x8x256xf32>
    %cst = arith.constant dense<0.000000e+00> : vector<1x4x256xf32>
    %1 = vector.multi_reduction <add>, %0, %cst [2] : vector<1x4x8x256xf32> to vector<1x4x256xf32>
    %2 = vector.shape_cast %1 : vector<1x4x256xf32> to vector<1x4x1x256xf32>
    %cst_3 = arith.constant 8.000000e+00 : f32
    %3 = vector.broadcast %cst_3 : f32 to vector<1x4x1x256xf32>
    %4 = arith.divf %2, %3 : vector<1x4x1x256xf32>
    %5 = vector.broadcast %4 : vector<1x4x1x256xf32> to vector<1x4x8x256xf32>
    %6 = arith.subf %0, %5 : vector<1x4x8x256xf32>
    %7 = arith.mulf %6, %6 : vector<1x4x8x256xf32>
    %cst_4 = arith.constant dense<0.000000e+00> : vector<1x4x256xf32>
    %8 = vector.multi_reduction <add>, %7, %cst_4 [2] : vector<1x4x8x256xf32> to vector<1x4x256xf32>
    %9 = vector.shape_cast %8 : vector<1x4x256xf32> to vector<1x4x1x256xf32>
    %cst_5 = arith.constant 8.000000e+00 : f32
    %10 = vector.broadcast %cst_5 : f32 to vector<1x4x1x256xf32>
    %11 = arith.divf %9, %10 : vector<1x4x1x256xf32>
    %cst_6 = arith.constant 9.99999974E-6 : f32
    %12 = vector.broadcast %cst_6 : f32 to vector<1x4x1x256xf32>
    %13 = arith.addf %11, %12 : vector<1x4x1x256xf32>
    %14 = math.rsqrt %13 : vector<1x4x1x256xf32>
    %c0_7 = arith.constant 0 : index
    %c0_8 = arith.constant 0 : index
    %c0_9 = arith.constant 0 : index
    %15 = vector.load %arg3[%c0_7, %c0_8, %c0_9] : memref<4x8x1xf32, #tpu.memory_space<vmem>>, vector<4x8x1xf32>
    %16 = vector.shape_cast %15 : vector<4x8x1xf32> to vector<1x4x8x1xf32>
    %c0_10 = arith.constant 0 : index
    %c0_11 = arith.constant 0 : index
    %c0_12 = arith.constant 0 : index
    %17 = vector.load %arg4[%c0_10, %c0_11, %c0_12] : memref<4x8x1xf32, #tpu.memory_space<vmem>>, vector<4x8x1xf32>
    %18 = vector.shape_cast %17 : vector<4x8x1xf32> to vector<1x4x8x1xf32>
    %19 = vector.broadcast %14 : vector<1x4x1x256xf32> to vector<1x4x8x256xf32>
    %20 = arith.mulf %6, %19 : vector<1x4x8x256xf32>
    %21 = vector.broadcast %16 : vector<1x4x8x1xf32> to vector<1x4x8x256xf32>
    %22 = arith.mulf %20, %21 : vector<1x4x8x256xf32>
    %23 = vector.broadcast %18 : vector<1x4x8x1xf32> to vector<1x4x8x256xf32>
    %24 = arith.addf %22, %23 : vector<1x4x8x256xf32>
    %c0_13 = arith.constant 0 : index
    %c0_14 = arith.constant 0 : index
    %c0_15 = arith.constant 0 : index
    %c0_16 = arith.constant 0 : index
    %25 = vector.load %arg5[%c0_13, %c0_14, %c0_15, %c0_16] : memref<1x4x8x256xf32, #tpu.memory_space<vmem>>, vector<1x4x8x256xf32>
    tpu.vector_store %arg5[%c0_13, %c0_14, %c0_15, %c0_16], %24 {strides = array<i32>} : memref<1x4x8x256xf32, #tpu.memory_space<vmem>>, vector<1x4x8x256xf32>,
    return
  }
  func.func @transform_0(%arg0: i32, %arg1: i32) -> (i32, i32, i32, i32) {
    %c0_i32 = arith.constant 0 : i32
    %c0_i32_0 = arith.constant 0 : i32
    %c0_i32_1 = arith.constant 0 : i32
    return %arg0, %c0_i32, %c0_i32_0, %arg1 : i32, i32, i32, i32
  }
  func.func @transform_1(%arg0: i32, %arg1: i32) -> (i32, i32, i32) {
    %c0_i32 = arith.constant 0 : i32
    %c0_i32_0 = arith.constant 0 : i32
    %c0_i32_1 = arith.constant 0 : i32
    %c0_i32_2 = arith.constant 0 : i32
    return %c0_i32, %c0_i32_0, %c0_i32_1 : i32, i32, i32
  }
  func.func @transform_2(%arg0: i32, %arg1: i32) -> (i32, i32, i32) {
    %c0_i32 = arith.constant 0 : i32
    %c0_i32_0 = arith.constant 0 : i32
    %c0_i32_1 = arith.constant 0 : i32
    %c0_i32_2 = arith.constant 0 : i32
    return %c0_i32, %c0_i32_0, %c0_i32_1 : i32, i32, i32
  }
  func.func @transform_3(%arg0: i32, %arg1: i32) -> (i32, i32, i32, i32) {
    %c0_i32 = arith.constant 0 : i32
    %c0_i32_0 = arith.constant 0 : i32
    %c0_i32_1 = arith.constant 0 : i32
    return %arg0, %c0_i32, %c0_i32_0, %arg1 : i32, i32, i32, i32
  }
}

</mosaic_0001>

<bundles_post_ra>
// kernel: tpu_custom_call.1
= control target key start
LH: loop header
LB: loop body
LE: loop exit
PB: predicated region body
PF: predicated region fallthrough
CT: control target
= control target key end

     0   :  { %8 = vsyncpa [#allocation3], 0  ;;  %s1028_s0 = inlined_call_operand.hbm [shape: f32[2,4,8,256], index: 0, kind: input, shape index: {}]   ;;  %s1029_s1 = inlined_call_operand.vmem [shape: f32[4,8,1], index: 1, kind: input, shape index: {}]   ;;  %s1030_s2 = inlined_call_operand.vmem [shape: f32[4,8,1], index: 2, kind: input, shape index: {}]   ;;  %s1031_s3 = inlined_call_operand.hbm [shape: f32[2,4,8,256], index: 3, kind: output, shape index: {}]  }
   0x1   :  { %10 = vsyncpa [#allocation3 + $0x1], 0 }
   0x2   :  { %11 = vsyncpa [#allocation4], 0 }
   0x3   :  { %13 = vsyncpa [#allocation4 + $0x1], 0  ;;  %s784_s12 = smov 0   ;;  %s786_s13 = smov 0  }
   0x4   :  { %s788_s14 = smov 0   ;;  %s790_s15 = smov 0  }
   0x5   :  { %s792_s16 = smov 0   ;;  %s794_s17 = smov 0  }
   0x6 LB: > { %s545_s18 = sadd.s32 4294967295, %s755_s17   ;;  %s546_s19 = sadd.s32 4294967294, %s755_s17   ;;  %s755_s17 = sphi %s794_s17, %s19_s17   ;;  %s751_s16 = sphi %s792_s16, %s1042_s16   ;;  %s747_s15 = sphi %s790_s15, %s1041_s15   ;;  %s743_s14 = sphi %s788_s14, %s1040_s14   ;;  %s739_s13 = sphi %s786_s13, %s1039_s13   ;;  %s735_s12 = sphi %s784_s12, %s1038_s12  }
   0x7   : > { %s31_s20 = sadd.s32 1, %s751_s16  ;;  %s40_s21 = sadd.s32 1, %s743_s14 }
   0x8   : > { %p33_p0 = scmp.ge.s32.totalorder %s31_s20, 2  ;;  %p47_p1 = scmp.ne.s32.totalorder %s743_s14, %s739_s13 }
   0x9   : > { %p48_p2 = scmp.eq.s32.totalorder %s755_s17, 0  ;;  %p53_p3 = scmp.ne.s32.totalorder %s739_s13, %s735_s12 }
   0xa   : > { %s1044_s20 = smov (%p33_p0, %s31_s20), 0  ;;  %p54_p5 = scmp.eq.s32.totalorder %s545_s18, 0 }
   0xb   : > { %p825_p4 = por %p48_p2, %p47_p1  ;;  %s35_s23 = ssub.s32 %s751_s16, %s1044_s20 }
   0xc   : > { %p121_p6 = scmp.eq.s32.totalorder %s545_s18, 1  ;;  %p38_p7 = scmp.eq.s32.totalorder %s35_s23, 0 }
   0xd   : > { %p831_p8 = por %p54_p5, %p53_p3  ;;  %p127_p10 = scmp.eq.s32.totalorder %s546_s19, 1 }
   0xe   : > { %p835_p9 = por %p121_p6, %p47_p1  ;;  %p574_p13 = scmp.lt.s32.totalorder %s755_s17, 2 }
   0xf   : > { %s840_s26 = scalar_select %p38_p7, %s743_s14, %s40_s21  }
  0x10   : > { %p842_p11 = por %p127_p10, %p53_p3  ;;  %s153_s28 = sand.u32 1, %s743_s14  }
  0x11   : > { %s549_s29 = sshll.u32 %s153_s28, 6  ;;  %s560_s30 = sshll.u32 %s751_s16, 10 }
  0x12   : > { %s165_s6 = scalar_lea.hbm %s1028_s0, %s560_s30  ;;  %s157_s7 = scalar_lea.vmem [#allocation2], %s549_s29 }
  0x13   : > { %s166_s8 = sshll.u32 %s157_s7, 4  ;;  %p855_p0 = pnand %p574_p13, %p825_p4  ;;  %s167_s8 = int_to_ptr.vmem [resolvable:$true] %s166_s8 }
  0x14   : > { %p552_p1 = scmp.ge.s32.totalorder %s755_s17, 1  ;;  %s154_s10 = scalar_lea.sflag [#allocation3], %s153_s28 }
  0x15   : > { %p649_p2 = pneg %p855_p0  ;;  %s660_s11 = scalar_lea.vmem %s167_s8, 1024 }
  0x16   : > { %p661_p3 = scmp.ne.s32.totalorder %s167_s8, %s660_s11  ;;  %s757_s18 = smov [#allocation2]  }
  0x17   : > { %s665_s19 = sshll.u32 %s757_s18, 4  ;;  %s666_s19 = int_to_ptr.vmem [resolvable:$false] %s665_s19 }
  0x18   : > { %p663_p5 = pnand %p661_p3, %p649_p2  ;;  %s667_s21 = scalar_lea.vmem %s666_s19, 2048 }
  0x19   : > { %p668_p7 = scmp.lt.s32.totalorder %s167_s8, %s666_s19  ;;  %p669_p10 = scmp.lt.s32.totalorder %s667_s21, %s660_s11 }
  0x1a   : > { %p664_p6 = pneg %p663_p5 }
  0x1b   : > { %p670_p12 = por %p669_p10, %p668_p7 }
  0x1d   : > { %p671_p4 = pnand %p670_p12, %p664_p6 }
  0x1f   : > { %674 = shalt.err (!%p671_p4)
}
  0x20   : > { %s758_s22 = smov 256   ;;  %s759_s23 = smov 16  }
  0x21   : > { %569 = dma.hbm_to_vmem [thread:$0]  (!%p855_p0), %s165_s6, 1024, %s167_s8, %s154_s10, %s758_s22, %s758_s22, %s759_s23  }
  0x22   : > { %p174_p13 = scmp.lt.s32.totalorder %s755_s17, 3 }
  0x24   : > { %p175_p2 = pnand %p552_p1, %p174_p13 }
  0x25   : > { %s868_s28 = sand.u32 (!%p175_p2), 1, %s739_s13  }
  0x26   : > { %178 = sbr.rel (%p175_p2) target bundleno = 199 (0xc7), region = 32  ;;  %s553_s29 = sshll.u32 (!%p175_p2), %s868_s28, 6 }
  0x27   : > { %s181_s30 = scalar_lea.sflag (!%p175_p2), [#allocation3], %s868_s28  ;;  %s874_s4 = scalar_lea.vmem (!%p175_p2), [#allocation2], %s553_s29 }
  0x2b   : > { %726 = dma.done.wait (%p831_p8), %s181_s30, 1024  }
  0x2c   : > { %728 = vsyncadd (%p831_p8), %s181_s30, 4294966272  ;;  %v760_v0 = vmov 0   ;;  %v364_v1 = vld [vmem:[%s1029_s1 + $0x10] sm:$0xff]  ;;  %v362_v2 = vld [vmem:[%s1029_s1] sm:$0xff]  ;;  %s561_s8 = sshll.u32 %s747_s15, 10  ;;  %s443_s10 = scalar_lea.sflag [#allocation4], %s868_s28 }
  0x2d   : > { %630 = vset.pattern.permute.xlu1 %v760_v0  ;;  %629 = vset.pattern.permute.xlu0 %v760_v0  ;;  %v365_v3 = vld [vmem:[%s1029_s1 + $0x18] sm:$0xff]  ;;  %v363_v4 = vld [vmem:[%s1029_s1 + $0x8] sm:$0xff]  ;;  %v366_v6 = vld [vmem:[%s1030_s2] sm:$0xff]  ;;  %s980_s15 = scalar_lea.hbm %s1031_s3, %s561_s8  ;;  %s761_s11 = smov [#allocation5]  }
  0x2e   : > { %390 = vperm.xlu1 %630, %v364_v1   ;;  %380 = vperm.xlu0 %629, %v362_v2   ;;  %v367_v5 = vld [vmem:[%s1030_s2 + $0x8] sm:$0xff]  ;;  %v369_v7 = vld [vmem:[%s1030_s2 + $0x18] sm:$0xff]  ;;  %v368_v8 = vld [vmem:[%s1030_s2 + $0x10] sm:$0xff]  ;;  %s679_s18 = sshll.u32 %s761_s11, 4  ;;  %s680_s18 = int_to_ptr.vmem [resolvable:$false] %s679_s18 }
  0x2f   : > { %v213_v9 = vld [vmem:[%s874_s4 + $0x20] sm:$0xff]  ;;  %v210_v11 = vld [vmem:[%s874_s4 + $0x8] sm:$0xff]  ;;  %v908_v13 = vld [vmem:[%s874_s4 + $0x10] sm:$0xff]  ;;  %s681_s19 = scalar_lea.vmem %s680_s18, 2048 }
  0x30   : > { %v209_v10 = vld [vmem:[%s874_s4] sm:$0xff]  ;;  %v241_v12 = vrot.slane %v213_v9, 4  ;;  %v911_v15 = vld [vmem:[%s874_s4 + $0x18] sm:$0xff]  ;;  %v914_v16 = vld [vmem:[%s874_s4 + $0x28] sm:$0xff]  ;;  %v223_v17 = vrot.slane %v210_v11, 4  ;;  %v229_v19 = vrot.slane %v908_v13, 4 }
  0x31   : > { %v217_v14 = vrot.slane %v209_v10, 4  ;;  %v917_v18 = vld [vmem:[%s874_s4 + $0x30] sm:$0xff]  ;;  %v216_v21 = vld [vmem:[%s874_s4 + $0x38] sm:$0xff]  ;;  %v235_v22 = vrot.slane %v911_v15, 4  ;;  %v247_v23 = vrot.slane %v914_v16, 4  ;;  %s206_s4 = scalar_lea.vmem [#allocation5], %s553_s29 }
  0x32   : > { %395 = vperm.xlu1 %630, %v365_v3   ;;  %385 = vperm.xlu0 %629, %v363_v4   ;;  %v242_v20 = vadd.f32 %v241_v12, %v213_v9  ;;  %v224_v25 = vadd.f32 %v223_v17, %v210_v11  ;;  %v253_v26 = vrot.slane %v917_v18, 4  ;;  %v259_v27 = vrot.slane %v216_v21, 4  ;;  %s458_s7 = sshll.u32 %s206_s4, 4  ;;  %s975_s7 = int_to_ptr.vmem [resolvable:$true] %s458_s7 }
  0x33   : > { %v218_v24 = vadd.f32 %v217_v14, %v209_v10  ;;  %v230_v28 = vadd.f32 %v229_v19, %v908_v13  ;;  %v236_v30 = vadd.f32 %v235_v22, %v911_v15  ;;  %v248_v31 = vadd.f32 %v247_v23, %v914_v16  ;;  %s675_s24 = scalar_lea.vmem %s975_s7, 1024  ;;  %p682_p1 = scmp.lt.s32.totalorder %s975_s7, %s680_s18 }
  0x34   : > { %v243_v29 = vrot.slane %v242_v20, 2  ;;  %v225_v33 = vrot.slane %v224_v25, 2  ;;  %v254_v34 = vadd.f32 %v253_v26, %v917_v18  ;;  %v260_v35 = vadd.f32 %v259_v27, %v216_v21  ;;  %p676_p8 = scmp.ne.s32.totalorder %s975_s7, %s675_s24  ;;  %p683_p3 = scmp.lt.s32.totalorder %s681_s19, %s675_s24 }
  0x35   : > { %v219_v32 = vrot.slane %v218_v24, 2  ;;  %v231_v36 = vrot.slane %v230_v28, 2  ;;  %v237_v38 = vrot.slane %v236_v30, 2  ;;  %v249_v39 = vrot.slane %v248_v31, 2 }
  0x36   : > { %413 = vperm.xlu1 %630, %v367_v5   ;;  %408 = vperm.xlu0 %629, %v366_v6   ;;  %v244_v37 = vadd.f32 %v243_v29, %v242_v20  ;;  %v226_v41 = vadd.f32 %v225_v33, %v224_v25  ;;  %v255_v42 = vrot.slane %v254_v34, 2  ;;  %v261_v43 = vrot.slane %v260_v35, 2  ;;  %p677_p12 = pnand %p676_p8, %p835_p9  ;;  %p684_p5 = por %p683_p3, %p682_p1 }
  0x37   : > { %v220_v40 = vadd.f32 %v219_v32, %v218_v24  ;;  %v232_v44 = vadd.f32 %v231_v36, %v230_v28  ;;  %v238_v46 = vadd.f32 %v237_v38, %v236_v30  ;;  %v250_v47 = vadd.f32 %v249_v39, %v248_v31 }
  0x38   : > { %v245_v45 = vrot.slane %v244_v37, 1  ;;  %v227_v49 = vrot.slane %v226_v41, 1  ;;  %v256_v50 = vadd.f32 %v255_v42, %v254_v34  ;;  %v262_v51 = vadd.f32 %v261_v43, %v260_v35  ;;  %p678_p0 = pneg %p677_p12 }
  0x39   : > { %v221_v48 = vrot.slane %v220_v40, 1  ;;  %v233_v52 = vrot.slane %v232_v44, 1  ;;  %v239_v54 = vrot.slane %v238_v46, 1  ;;  %v251_v55 = vrot.slane %v250_v47, 1 }
  0x3a   : > { %423 = vperm.xlu1 %630, %v369_v7   ;;  %418 = vperm.xlu0 %629, %v368_v8   ;;  %v246_v53 = vadd.f32 %v245_v45, %v244_v37  ;;  %v228_v57 = vadd.f32 %v227_v49, %v226_v41  ;;  %v257_v58 = vrot.slane %v256_v50, 1  ;;  %v263_v59 = vrot.slane %v262_v51, 1  ;;  %p685_p6 = pnand %p684_p5, %p678_p0 }
  0x3b   : > { %v222_v56 = vadd.f32 %v221_v48, %v220_v40  ;;  %v234_v60 = vadd.f32 %v233_v52, %v232_v44  ;;  %v240_v62 = vadd.f32 %v239_v54, %v238_v46  ;;  %v252_v63 = vadd.f32 %v251_v55, %v250_v47 }
  0x3c   : > { %v270_v61 = vmul.f32 0.125, %v246_v53  ;;  %v267_v1 = vmul.f32 0.125, %v228_v57  ;;  %v258_v2 = vadd.f32 %v257_v58, %v256_v50  ;;  %v264_v3 = vadd.f32 %v263_v59, %v262_v51 }
  0x3d   : > { %v266_v0 = vmul.f32 0.125, %v222_v56  ;;  %v268_v4 = vmul.f32 0.125, %v234_v60  ;;  %v269_v6 = vmul.f32 0.125, %v240_v62  ;;  %v271_v7 = vmul.f32 0.125, %v252_v63 }
  0x3e   : > { %v928_v5 = vsub.f32 %v213_v9, %v270_v61  ;;  %v932_v12 = vsub.f32 %v210_v11, %v267_v1  ;;  %v272_v14 = vmul.f32 0.125, %v258_v2  ;;  %v273_v17 = vmul.f32 0.125, %v264_v3 }
  0x3f   : > { %v930_v8 = vsub.f32 %v209_v10, %v266_v0  ;;  %v935_v19 = vsub.f32 %v908_v13, %v268_v4  ;;  %v940_v22 = vsub.f32 %v911_v15, %v269_v6  ;;  %v943_v9 = vsub.f32 %v914_v16, %v271_v7 }
  0x40   : > { %v286_v20 = vmul.f32 %v928_v5, %v928_v5  ;;  %v283_v11 = vmul.f32 %v932_v12, %v932_v12  ;;  %v950_v23 = vsub.f32 %v917_v18, %v272_v14  ;;  %v952_v13 = vsub.f32 %v216_v21, %v273_v17 }
  0x41   : > { %v282_v10 = vmul.f32 %v930_v8, %v930_v8  ;;  %v284_v24 = vmul.f32 %v935_v19, %v935_v19  ;;  %v285_v15 = vmul.f32 %v940_v22, %v940_v22  ;;  %v287_v16 = vmul.f32 %v943_v9, %v943_v9 }
  0x42   : > { %v314_v25 = vrot.slane %v286_v20, 4  ;;  %v296_v27 = vrot.slane %v283_v11, 4  ;;  %v288_v28 = vmul.f32 %v950_v23, %v950_v23  ;;  %v289_v18 = vmul.f32 %v952_v13, %v952_v13 }
  0x43   : > { %v290_v26 = vrot.slane %v282_v10, 4  ;;  %v302_v21 = vrot.slane %v284_v24, 4  ;;  %v308_v30 = vrot.slane %v285_v15, 4  ;;  %v320_v31 = vrot.slane %v287_v16, 4 }
  0x44   : > { %v315_v29 = vadd.f32 %v314_v25, %v286_v20  ;;  %v297_v33 = vadd.f32 %v296_v27, %v283_v11  ;;  %v326_v34 = vrot.slane %v288_v28, 4  ;;  %v332_v35 = vrot.slane %v289_v18, 4 }
  0x45   : > { %v291_v32 = vadd.f32 %v290_v26, %v282_v10  ;;  %v303_v36 = vadd.f32 %v302_v21, %v284_v24  ;;  %v309_v38 = vadd.f32 %v308_v30, %v285_v15  ;;  %v321_v39 = vadd.f32 %v320_v31, %v287_v16 }
  0x46   : > { %v316_v37 = vrot.slane %v315_v29, 2  ;;  %v298_v41 = vrot.slane %v297_v33, 2  ;;  %v327_v42 = vadd.f32 %v326_v34, %v288_v28  ;;  %v333_v43 = vadd.f32 %v332_v35, %v289_v18 }
  0x47   : > { %v292_v40 = vrot.slane %v291_v32, 2  ;;  %v304_v44 = vrot.slane %v303_v36, 2  ;;  %v310_v46 = vrot.slane %v309_v38, 2  ;;  %v322_v47 = vrot.slane %v321_v39, 2 }
  0x48   : > { %v317_v45 = vadd.f32 %v316_v37, %v315_v29  ;;  %v299_v49 = vadd.f32 %v298_v41, %v297_v33  ;;  %v328_v50 = vrot.slane %v327_v42, 2  ;;  %v334_v51 = vrot.slane %v333_v43, 2 }
  0x49   : > { %v293_v48 = vadd.f32 %v292_v40, %v291_v32  ;;  %v305_v52 = vadd.f32 %v304_v44, %v303_v36  ;;  %v311_v54 = vadd.f32 %v310_v46, %v309_v38  ;;  %v323_v55 = vadd.f32 %v322_v47, %v321_v39 }
  0x4a   : > { %v318_v53 = vrot.slane %v317_v45, 1  ;;  %v300_v57 = vrot.slane %v299_v49, 1  ;;  %v329_v58 = vadd.f32 %v328_v50, %v327_v42  ;;  %v335_v59 = vadd.f32 %v334_v51, %v333_v43 }
  0x4b   : > { %v294_v56 = vrot.slane %v293_v48, 1  ;;  %v306_v60 = vrot.slane %v305_v52, 1  ;;  %v312_v62 = vrot.slane %v311_v54, 1  ;;  %v324_v63 = vrot.slane %v323_v55, 1 }
  0x4c   : > { %v319_v61 = vadd.f32 %v318_v53, %v317_v45  ;;  %v301_v1 = vadd.f32 %v300_v57, %v299_v49  ;;  %v330_v2 = vrot.slane %v329_v58, 1  ;;  %v336_v3 = vrot.slane %v335_v59, 1 }
  0x4d   : > { %v295_v0 = vadd.f32 %v294_v56, %v293_v48  ;;  %v307_v4 = vadd.f32 %v306_v60, %v305_v52  ;;  %v313_v7 = vadd.f32 %v312_v62, %v311_v54  ;;  %v325_v14 = vadd.f32 %v324_v63, %v323_v55 }
  0x4e   : > { %v342_v6 = vmul.f32 0.125, %v319_v61  ;;  %v339_v20 = vmul.f32 0.125, %v301_v1  ;;  %v331_v10 = vadd.f32 %v330_v2, %v329_v58  ;;  %v337_v11 = vadd.f32 %v336_v3, %v335_v59 }
  0x4f   : > { %v338_v17 = vmul.f32 0.125, %v295_v0  ;;  %v340_v24 = vmul.f32 0.125, %v307_v4  ;;  %v341_v15 = vmul.f32 0.125, %v313_v7  ;;  %v343_v16 = vmul.f32 0.125, %v325_v14 }
  0x50   : > { %v350_v25 = vadd.f32 1e-05, %v342_v6  ;;  %v347_v27 = vadd.f32 1e-05, %v339_v20  ;;  %v344_v28 = vmul.f32 0.125, %v331_v10  ;;  %v345_v18 = vmul.f32 0.125, %v337_v11 }
  0x51   : > { %v346_v26 = vadd.f32 1e-05, %v338_v17  ;;  %v348_v21 = vadd.f32 1e-05, %v340_v24  ;;  %v349_v29 = vadd.f32 1e-05, %v341_v15 }
  0x52   : > { %631 = vrsqrt.f32 %v350_v25  ;;  %v351_v30 = vadd.f32 1e-05, %v343_v16  ;;  %v352_v31 = vadd.f32 1e-05, %v344_v28  ;;  %v353_v32 = vadd.f32 1e-05, %v345_v18 }
  0x53   : > { %633 = vrsqrt.f32 %v346_v26 }
  0x54   : > { %635 = vrsqrt.f32 %v347_v27 }
  0x55   : > { %637 = vrsqrt.f32 %v348_v21 }
  0x56   : > { %639 = vrsqrt.f32 %v349_v29 }
  0x57   : > { %641 = vrsqrt.f32 %v351_v30 }
  0x58   : > { %643 = vrsqrt.f32 %v352_v31 }
  0x59   : > { %645 = vrsqrt.f32 %v353_v32 }
  0x5f   : > { %v632_v33 = vpop.eup %631 }
  0x60   : > { %v634_v34 = vpop.eup %633  ;;  %v374_v49 = vmul.f32 %v632_v33, %v928_v5 }
  0x61   : > { %v636_v35 = vpop.eup %635  ;;  %v370_v43 = vmul.f32 %v634_v34, %v930_v8 }
  0x62   : > { %v638_v36 = vpop.eup %637  ;;  %v371_v44 = vmul.f32 %v636_v35, %v932_v12 }
  0x63   : > { %v640_v37 = vpop.eup %639  ;;  %v372_v45 = vmul.f32 %v638_v36, %v935_v19 }
  0x64   : > { %v642_v40 = vpop.eup %641  ;;  %v373_v46 = vmul.f32 %v640_v37, %v940_v22 }
  0x65   : > { %v644_v41 = vpop.eup %643  ;;  %v375_v50 = vmul.f32 %v642_v40, %v943_v9 }
  0x66   : > { %v646_v42 = vpop.eup %645  ;;  %v376_v51 = vmul.f32 %v644_v41, %v950_v23 }
  0x67   : > { %v377_v52 = vmul.f32 %v646_v42, %v952_v13 }
  0xa9   : > { %v391_v38 = vpop.permute.xlu1 %390  ;;  %v381_v39 = vpop.permute.xlu0 %380 }
  0xaa   : > { %v398_v53 = vmul.f32 %v381_v39, %v370_v43  ;;  %v399_v54 = vmul.f32 %v381_v39, %v371_v44  ;;  %v402_v58 = vmul.f32 %v391_v38, %v374_v49  ;;  %v403_v9 = vmul.f32 %v391_v38, %v375_v50 }
  0xad   : > { %v396_v47 = vpop.permute.xlu1 %395  ;;  %v386_v48 = vpop.permute.xlu0 %385 }
  0xae   : > { %v400_v8 = vmul.f32 %v386_v48, %v372_v45  ;;  %v401_v55 = vmul.f32 %v386_v48, %v373_v46  ;;  %v404_v59 = vmul.f32 %v396_v47, %v376_v51  ;;  %v405_v23 = vmul.f32 %v396_v47, %v377_v52 }
  0xb1   : > { %v414_v12 = vpop.permute.xlu1 %413  ;;  %v409_v19 = vpop.permute.xlu0 %408 }
  0xb2   : > { %v428_v22 = vadd.f32 %v414_v12, %v400_v8  ;;  %v429_v56 = vadd.f32 %v414_v12, %v401_v55  ;;  %v426_v57 = vadd.f32 %v409_v19, %v398_v53  ;;  %v427_v5 = vadd.f32 %v409_v19, %v399_v54 }
  0xb4   : > { %436 = vst [vmem:[%s206_s4 + $0x10] sm:$0xff] %v428_v22  ;;  %437 = vst [vmem:[%s206_s4 + $0x18] sm:$0xff] %v429_v56 }
  0xb5   : > { %434 = vst [vmem:[%s206_s4] sm:$0xff] %v426_v57  ;;  %435 = vst [vmem:[%s206_s4 + $0x8] sm:$0xff] %v427_v5  ;;  %v424_v13 = vpop.permute.xlu1 %423  ;;  %v419_v60 = vpop.permute.xlu0 %418 }
  0xb6   : > { %v432_v61 = vadd.f32 %v424_v13, %v404_v59  ;;  %v433_v62 = vadd.f32 %v424_v13, %v405_v23  ;;  %v430_v63 = vadd.f32 %v419_v60, %v402_v58  ;;  %v431_v0 = vadd.f32 %v419_v60, %v403_v9 }
  0xb8   : > { %440 = vst [vmem:[%s206_s4 + $0x30] sm:$0xff] %v432_v61  ;;  %441 = vst [vmem:[%s206_s4 + $0x38] sm:$0xff] %v433_v62 }
  0xb9   : > { %438 = vst [vmem:[%s206_s4 + $0x20] sm:$0xff] %v430_v63  ;;  %439 = vst [vmem:[%s206_s4 + $0x28] sm:$0xff] %v431_v0 }
  0xba   : > { %688 = shalt.err (!%p685_p6)
}
  0xbb   : > { %s689_s21 = scalar_lea.hbm %s980_s15, 1024  ;;  %s693_s30 = scalar_lea.hbm %s1031_s3, 2048 }
  0xbc   : > { %p690_p7 = scmp.ne.s32.totalorder %s980_s15, %s689_s21  ;;  %p694_p13 = scmp.lt.s32.totalorder %s980_s15, %s1031_s3 }
  0xbd   : > { %p695_p2 = scmp.lt.s32.totalorder %s693_s30, %s689_s21 }
  0xbe   : > { %p691_p10 = pnand %p690_p7, %p835_p9 }
  0xbf   : > { %p696_p8 = por %p695_p2, %p694_p13 }
  0xc0   : > { %p692_p4 = pneg %p691_p10 }
  0xc2   : > { %p697_p12 = pnand %p696_p8, %p692_p4 }
  0xc4   : > { %700 = shalt.err (!%p697_p12)
}
  0xc5   : > { %s762_s4 = smov 256   ;;  %s763_s8 = smov 16  }
  0xc6   : > { %564 = dma.vmem_to_hbm [thread:$0]  (%p835_p9), %s975_s7, 1024, %s980_s15, %s443_s10, %s762_s4, %s762_s4, %s763_s8  }
  0xc7 PF: > { %s473_s29 = sand.u32 1, %s735_s12   ;;  %p1037_p0 = scmp.ge.s32.totalorder %s755_s17, 2 }
  0xc8   : > { %s474_s9 = scalar_lea.sflag [#allocation4], %s473_s29 }
  0xc9   : > { %p571_p1 = pnand %p1037_p0, %p842_p11 }
  0xcb   : > { %p572_p3 = pneg %p571_p1 }
  0xcd   : > { %730 = dma.done.wait (%p572_p3), %s474_s9, 1024  }
  0xce   : > { %732 = vsyncadd (%p572_p3), %s474_s9, 4294966272  ;;  %s19_s17 = sadd.s32 1, %s755_s17   ;;  %s1038_s12 = smov %s739_s13 }
  0xcf   : > { %p16_p5 = scmp.ge.s32.totalorder %s19_s17, 4   ;;  %s1039_s13 = smov %s743_s14 }
  0xd0   : > { %s1040_s14 = smov %s840_s26  ;;  %s1041_s15 = smov %s751_s16 }
  0xd1   : > { %s1042_s16 = smov %s1044_s20  ;;  %18 = sbr.rel (!%p16_p5) target bundleno = 6 (0x6), region = 77 }
  0xd6   :  { %479 = vsyncpa [#allocation3], 1 }
  0xd7   :  { %481 = vsyncpa [#allocation3 + $0x1], 1 }
  0xd8   :  { %482 = vsyncpa [#allocation4], 1 }
  0xd9   :  { %484 = vsyncpa [#allocation4 + $0x1], 1 }

</bundles_post_ra>
